<compile_context>
chip_gen: v6e
topology: v6e:2x2x1
jax: 0.10.0
libtpu: 0.0.40
codegen_flags: <defaults>
</compile_context>

<pallas_src>
import functools

import jax
import jax.numpy as jnp
from jax.experimental import pallas as pl
from jax.experimental.pallas import tpu as pltpu


def _round_up(v: int, m: int) -> int:
    return (v + m - 1) // m * m


def _predictor_kernel(x_ref, w_ref, b_ref, out_ref):
    # x_ref:  (TN, C)      activation row tile
    # w_ref:  (C, Kp)      fused [W_cls^T | W_bbox^T | 0-pad], lane-padded
    # b_ref:  (1, Kp)      fused bias (f32), lane-padded
    # out_ref:(TN, Kp)     fused lane-dense output tile
    acc = jnp.dot(x_ref[...], w_ref[...], preferred_element_type=jnp.float32)
    out_ref[...] = (acc + b_ref[...]).astype(out_ref.dtype)


def prepare_fast_rcnn_params(w_cls, b_cls, w_bbox, b_bbox, compute_dtype=None):
    """One-time parameter prep (call at model load, NOT per forward).

    w_cls:  (K, C)  PyTorch nn.Linear layout
    b_cls:  (K,)
    w_bbox: (4K, C)
    b_bbox: (4K,)
    Returns a dict of fused / padded parameters + metadata.
    """
    k, c = w_cls.shape
    k4 = w_bbox.shape[0]
    kout = k + k4
    kp = _round_up(kout, 128)          # lane-dense output width

    # (C, K) | (C, 4K)  ->  (C, K+4K)  -> zero-pad to (C, Kp)
    w_fused = jnp.concatenate([jnp.transpose(w_cls), jnp.transpose(w_bbox)], axis=1)
    w_fused = jnp.pad(w_fused, ((0, 0), (0, kp - kout)))
    b_fused = jnp.concatenate([b_cls, b_bbox]).reshape(1, kout).astype(jnp.float32)
    b_fused = jnp.pad(b_fused, ((0, 0), (0, kp - kout)))

    if compute_dtype is not None:
        w_fused = w_fused.astype(compute_dtype)   # e.g. bf16 on v6e/v7x

    return {
        "w_fused": w_fused,        # (C, Kp)
        "b_fused": b_fused,        # (1, Kp), f32
        "num_classes": k,
        "bbox_out": k4,
        "in_channels": c,
        "kp": kp,
        "compute_dtype": compute_dtype,
    }


@functools.partial(jax.jit, static_argnames=("row_tile",))
def _fused_head_call(x2d_padded, w_fused, b_fused, *, row_tile):
    n_pad, c = x2d_padded.shape
    kp = w_fused.shape[1]
    grid = (n_pad // row_tile,)

    cost = pl.CostEstimate(
        flops=2 * n_pad * c * kp,
        transcendentals=0,
        bytes_accessed=(x2d_padded.size * x2d_padded.dtype.itemsize
                        + w_fused.size * w_fused.dtype.itemsize
                        + b_fused.size * b_fused.dtype.itemsize
                        + n_pad * kp * 4),
    )

    return pl.pallas_call(
        _predictor_kernel,
        out_shape=jax.ShapeDtypeStruct((n_pad, kp), jnp.float32),
        grid=grid,
        in_specs=[
            pl.BlockSpec((row_tile, c), lambda i: (i, 0)),   # x row tile
            pl.BlockSpec((c, kp), lambda i: (0, 0)),         # fused weights (resident)
            pl.BlockSpec((1, kp), lambda i: (0, 0)),         # fused bias (resident)
        ],
        out_specs=pl.BlockSpec((row_tile, kp), lambda i: (i, 0)),
        compiler_params=pltpu.CompilerParams(
            dimension_semantics=("parallel",),
        ),
        cost_estimate=cost,
    )(x2d_padded, w_fused, b_fused)


def fast_rcnn_predictor_forward(x, params, *, max_row_tile=512):
    """Forward pass matching FastRCNNPredictor.forward.

    x: (N, C) or (N, C, 1, 1).
    Returns (scores (N, K), bbox_deltas (N, 4K)), both float32.
    """
    if x.ndim == 4:
        assert list(x.shape[2:]) == [1, 1], "spatial dims must be [1, 1]"
    x2d = x.reshape(x.shape[0], -1)                      # flatten(start_dim=1)

    n, c = x2d.shape
    assert c == params["in_channels"]
    k = params["num_classes"]
    k4 = params["bbox_out"]

    compute_dtype = params["compute_dtype"]
    if compute_dtype is not None:
        x2d = x2d.astype(compute_dtype)

    # Row tile: multiple of 8 (sublane), capped; pad N up so the grid is exact.
    row_tile = min(max_row_tile, _round_up(n, 8))
    n_pad = _round_up(n, row_tile)
    if n_pad != n:
        x2d = jnp.pad(x2d, ((0, n_pad - n), (0, 0)))     # padded rows discarded below

    fused = _fused_head_call(x2d, params["w_fused"], params["b_fused"],
                             row_tile=row_tile)

    fused = fused[:n]                                    # strip row padding
    scores = fused[:, :k]
    bbox_deltas = fused[:, k:k + k4]
    return scores, bbox_deltas


def fast_rcnn_predictor(x, w_cls, b_cls, w_bbox, b_bbox, compute_dtype=None):
    """Convenience wrapper keeping the original (per-call) interface.

    For production use call prepare_fast_rcnn_params once and reuse `params`.
    """
    params = prepare_fast_rcnn_params(w_cls, b_cls, w_bbox, b_bbox,
                                      compute_dtype=compute_dtype)
    return fast_rcnn_predictor_forward(x, params)


if __name__ == "__main__":
    key = jax.random.PRNGKey(0)
    k_x, k_wc, k_bc, k_wb, k_bb = jax.random.split(key, 5)

    batch = 8
    in_channels = 32
    num_classes = 5

    # Input mimics the ROI box head output: (N, C, 1, 1), NCHW.
    x = jax.random.normal(k_x, (batch, in_channels, 1, 1), dtype=jnp.float32)

    # Deterministic parameter init (PyTorch nn.Linear shapes: (out, in), (out,)).
    w_cls = 0.05 * jax.random.normal(k_wc, (num_classes, in_channels), dtype=jnp.float32)
    b_cls = 0.05 * jax.random.normal(k_bc, (num_classes,), dtype=jnp.float32)
    w_bbox = 0.05 * jax.random.normal(k_wb, (num_classes * 4, in_channels), dtype=jnp.float32)
    b_bbox = 0.05 * jax.random.normal(k_bb, (num_classes * 4,), dtype=jnp.float32)

    # Hoisted, one-time parameter prep (fused + lane-padded weights).
    params = prepare_fast_rcnn_params(w_cls, b_cls, w_bbox, b_bbox,
                                      compute_dtype=None)  # set jnp.bfloat16 on v6e/v7x

    scores, bbox_deltas = fast_rcnn_predictor_forward(x, params)
    jax.block_until_ready((scores, bbox_deltas))

    # Reference check in plain JAX.
    x2d = x.reshape(batch, -1)
    ref_scores = x2d @ w_cls.T + b_cls
    ref_bbox = x2d @ w_bbox.T + b_bbox
    assert scores.shape == (batch, num_classes)
    assert bbox_deltas.shape == (batch, num_classes * 4)
    assert jnp.allclose(scores, ref_scores, atol=1e-5)
    assert jnp.allclose(bbox_deltas, ref_bbox, atol=1e-5)

    print("KERNEL_OK")
</pallas_src>

<mosaic_0001>
module attributes {stable_mosaic.version = 11 : i64} {
  func.func @_predictor_kernel(%arg0: i32, %arg1: memref<8x32xf32, #tpu.memory_space<vmem>>, %arg2: memref<32x128xf32, #tpu.memory_space<vmem>>, %arg3: memref<1x128xf32, #tpu.memory_space<vmem>>, %arg4: memref<8x128xf32, #tpu.memory_space<vmem>>) attributes {dimension_semantics = [#tpu.dimension_semantics<parallel>], iteration_bounds = array<i64: 1>, scalar_prefetch = 0 : i64, scratch_operands = 0 : i64, tpu.core_type = #tpu.core_type<tc>, window_params = [{transform_indices = @transform_0, window_bounds = array<i64: 8, 32>}, {pipeline_mode = #tpu.pipeline_mode<synchronous>, transform_indices = @transform_1, window_bounds = array<i64: 32, 128>}, {pipeline_mode = #tpu.pipeline_mode<synchronous>, transform_indices = @transform_2, window_bounds = array<i64: 1, 128>}, {transform_indices = @transform_3, window_bounds = array<i64: 8, 128>}]} {
    %c0 = arith.constant 0 : index
    %c0_0 = arith.constant 0 : index
    %0 = vector.load %arg1[%c0, %c0_0] : memref<8x32xf32, #tpu.memory_space<vmem>>, vector<8x32xf32>
    %c0_1 = arith.constant 0 : index
    %c0_2 = arith.constant 0 : index
    %1 = vector.load %arg2[%c0_1, %c0_2] : memref<32x128xf32, #tpu.memory_space<vmem>>, vector<32x128xf32>
    %cst = arith.constant dense<0.000000e+00> : vector<8x128xf32>
    %2 = tpu.matmul %0, %1, %cst {dimension_numbers = #tpu.dot_dimension_numbers<[1], [0], [0], [1], [0, 0, 1, 1], [], []>} : vector<8x32xf32>, vector<32x128xf32>, vector<8x128xf32> -> vector<8x128xf32>
    %c0_3 = arith.constant 0 : index
    %c0_4 = arith.constant 0 : index
    %3 = vector.load %arg3[%c0_3, %c0_4] : memref<1x128xf32, #tpu.memory_space<vmem>>, vector<1x128xf32>
    %4 = vector.broadcast %3 : vector<1x128xf32> to vector<8x128xf32>
    %5 = arith.addf %2, %4 : vector<8x128xf32>
    %c0_5 = arith.constant 0 : index
    %c0_6 = arith.constant 0 : index
    %6 = vector.load %arg4[%c0_5, %c0_6] : memref<8x128xf32, #tpu.memory_space<vmem>>, vector<8x128xf32>
    tpu.vector_store %arg4[%c0_5, %c0_6], %5 {strides = array<i32>} : memref<8x128xf32, #tpu.memory_space<vmem>>, vector<8x128xf32>,
    return
  }
  func.func @transform_0(%arg0: i32) -> (i32, i32) {
    %c0_i32 = arith.constant 0 : i32
    %c0_i32_0 = arith.constant 0 : i32
    return %arg0, %c0_i32 : i32, i32
  }
  func.func @transform_1(%arg0: i32) -> (i32, i32) {
    %c0_i32 = arith.constant 0 : i32
    %c0_i32_0 = arith.constant 0 : i32
    %c0_i32_1 = arith.constant 0 : i32
    return %c0_i32, %c0_i32_0 : i32, i32
  }
  func.func @transform_2(%arg0: i32) -> (i32, i32) {
    %c0_i32 = arith.constant 0 : i32
    %c0_i32_0 = arith.constant 0 : i32
    %c0_i32_1 = arith.constant 0 : i32
    return %c0_i32, %c0_i32_0 : i32, i32
  }
  func.func @transform_3(%arg0: i32) -> (i32, i32) {
    %c0_i32 = arith.constant 0 : i32
    %c0_i32_0 = arith.constant 0 : i32
    return %arg0, %c0_i32 : i32, i32
  }
}

</mosaic_0001>

<bundles_post_ra>
// kernel: _fused_head_call.1
= control target key start
LH: loop header
LB: loop body
LE: loop exit
PB: predicated region body
PF: predicated region fallthrough
CT: control target
= control target key end

     0   :  { %8 = vsyncpa [#allocation3], 0  ;;  %s274_s0 = inlined_call_operand.hbm [shape: f32[8,32], index: 0, kind: input, shape index: {}]   ;;  %s275_s1 = inlined_call_operand.hbm [shape: f32[32,128], index: 1, kind: input, shape index: {}]   ;;  %s276_s2 = inlined_call_operand.vmem [shape: f32[1,128], index: 2, kind: input, shape index: {}]   ;;  %s277_s3 = inlined_call_operand.hbm [shape: f32[8,128], index: 3, kind: output, shape index: {}]  }
   0x1   :  { %9 = vsyncpa [#allocation6], 0 }
   0x2   :  { %10 = vsyncpa [#allocation4], 0  ;;  %s235_s12 = smov [#allocation2]   ;;  %s236_s14 = smov [#allocation5]  }
   0x3   :  { %s17_s13 = sshll.u32 %s235_s12, 4  ;;  %s26_s15 = sshll.u32 %s236_s14, 4  ;;  %s18_s13 = int_to_ptr.vmem [resolvable:$true] %s17_s13  ;;  %s27_s15 = int_to_ptr.vmem [resolvable:$true] %s26_s15 }
   0x4   :  { %s177_s16 = scalar_lea.vmem %s18_s13, 128  ;;  %p182_p1 = scmp.lt.s32.totalorder %s18_s13, %s18_s13 }
   0x5   :  { %p178_p0 = scmp.ne.s32.totalorder %s18_s13, %s177_s16  ;;  %p183_p2 = scmp.lt.s32.totalorder %s177_s16, %s177_s16 }
   0x7   :  { %p184_p3 = por %p183_p2, %p182_p1 }
   0x9   :  { %p185_p4 = pnand %p184_p3, %p178_p0 }
   0xb   :  { %188 = shalt.err (!%p185_p4)
}
   0xc   :  { %20 = dma.hbm_to_vmem [thread:$0]  %s274_s0, 128, %s18_s13, [#allocation3]  }
   0xd   :  { %s197_s19 = scalar_lea.vmem %s27_s15, 512  ;;  %p202_p6 = scmp.lt.s32.totalorder %s27_s15, %s27_s15 }
   0xe   :  { %p198_p5 = scmp.ne.s32.totalorder %s27_s15, %s197_s19  ;;  %p203_p7 = scmp.lt.s32.totalorder %s197_s19, %s197_s19 }
  0x10   :  { %p204_p8 = por %p203_p7, %p202_p6 }
  0x12   :  { %p205_p9 = pnand %p204_p8, %p198_p5 }
  0x14   :  { %208 = shalt.err (!%p205_p9)
}
  0x15   :  { %s237_s20 = smov 128   ;;  %s238_s21 = smov 8  }
  0x16   :  { %32 = dma.hbm_to_vmem [thread:$0]  %s275_s1, 512, %s27_s15, [#allocation6], %s237_s20, %s237_s20, %s238_s21  }
  0x17   :  { %229 = dma.done.wait [#allocation3], 128  }
  0x18   :  { %230 = vsyncadd [#allocation3], 4294967168 }
  0x19   :  { %231 = dma.done.wait [#allocation6], 512  }
  0x1a   :  { %232 = vsyncadd [#allocation6], 4294966784  ;;  %v239_v0 = vmov 0.0   ;;  %vm240_vm0 = vmmov 0   ;;  %v45_v1 = vld [vmem:[#allocation5 + $0x18] sm:$0xff]  ;;  %v44_v2 = vld [vmem:[#allocation5 + $0x10] sm:$0xff] }
  0x1b   :  { %151 = vmatprep.subr.mxu0 %v239_v0  ;;  %159 = vmatprep.mubr.msk.f32.mxu0 %vm240_vm0, %v239_v0  ;;  %v43_v3 = vld [vmem:[#allocation5 + $0x8] sm:$0xff]  ;;  %v42_v4 = vld [vmem:[#allocation5] sm:$0xff]  ;;  %v41_v5 = vld [vmem:[#allocation2] sm:$0xff]  ;;  %vm53_vm1 = vcmask 261120   ;;  %s241_s24 = smov [#allocation7]  }
  0x1c   :  { %152 = vmatpush3.msra.mxu0 %v45_v1  ;;  %v144_v6 = vld [vmem:[%s276_s2] ss:$0 sm:$0xff]  ;;  %s134_s25 = sshll.u32 %s241_s24, 4  ;;  %s135_s25 = int_to_ptr.vmem [resolvable:$true] %s134_s25 }
  0x1d   :  { %153 = vmatprep.subr.mxu0 %v239_v0  ;;  %s209_s26 = scalar_lea.vmem %s135_s25, 128  ;;  %p214_p11 = scmp.lt.s32.totalorder %s135_s25, %s135_s25 }
  0x1e   :  { %154 = vmatpush3.msra.mxu0 %v44_v2  ;;  %p210_p10 = scmp.ne.s32.totalorder %s135_s25, %s209_s26  ;;  %p215_p12 = scmp.lt.s32.totalorder %s209_s26, %s209_s26 }
  0x1f   :  { %155 = vmatprep.subr.mxu0 %v239_v0 }
  0x20   :  { %156 = vmatpush3.msra.mxu0 %v43_v3  ;;  %p216_p13 = por %p215_p12, %p214_p11 }
  0x21   :  { %157 = vmatprep.subr.mxu0 %v239_v0 }
  0x22   :  { %158 = vmatpush3.msra.mxu0 %v42_v4  ;;  %p217_p0 = pnand %p216_p13, %p210_p10 }
  0x23   :  { %160 = vmatmul.mubr.msk.f32.vlgmr.msra.gmra.mxu0 %vm53_vm1, %v41_v5 }
  0xe3   :  { %v123_v7 = vpop.f32.mrf.mxu0 }
  0xe4   :  { %v124_v8 = vadd.f32 %v144_v6, %v123_v7 }
  0xe5   :  { %v161_v9 = vpop.f32.mrf.mxu0 }
  0xe6   :  { %127 = vst [vmem:[#allocation7] sm:$0xff] %v124_v8 }
  0xe7   :  { %220 = shalt.err (!%p217_p0)
}
  0xe8   :  { %137 = dma.vmem_to_hbm [thread:$0]  %s135_s25, 128, %s277_s3, [#allocation4]  }
  0xe9   :  { %233 = dma.done.wait [#allocation4], 128  }
  0xea   :  { %234 = vsyncadd [#allocation4], 4294967168 }
  0xeb   :  { %141 = vsyncpa [#allocation3], 1 }
  0xec   :  { %142 = vsyncpa [#allocation6], 1 }
  0xed   :  { %143 = vsyncpa [#allocation4], 1 }

</bundles_post_ra>
